<compile_context>
chip_gen: v7x
topology: tpu7x:2x2x1
jax: 0.10.0
libtpu: 0.0.40
codegen_flags: <defaults>
</compile_context>

<pallas_src>
import math
import functools

import jax
import jax.numpy as jnp
from jax import lax
from jax.experimental import pallas as pl
from jax.experimental.pallas import tpu as pltpu


# ---------------------------------------------------------------------------
# Kernel 1: fused per-head K/V projection (head-major, lane-dense output)
# ---------------------------------------------------------------------------
def _kv_proj_kernel(x_ref, wkv_ref, bkv_ref, kv_ref):
    """Grid (B, H), both axes parallel.

    x_ref   : (1, S, D_in)     bf16 ; index only on b -> resident across heads
    wkv_ref : (H, D_in, 2*hd)  bf16 ; constant index  -> fully resident
    bkv_ref : (H, 1, 2*hd)     f32  ; constant index  -> fully resident
    kv_ref  : (1, 1, S, 2*hd)  bf16 ; per head, columns are [K_h | V_h]
    """
    h = pl.program_id(1)
    kv = jnp.dot(x_ref[0], wkv_ref[h], preferred_element_type=jnp.float32)
    kv = kv + bkv_ref[h]
    kv_ref[0, 0] = kv.astype(kv_ref.dtype)
    # TODO(synk): for very long sequences on v7x (64 MiB VMEM) tile the S axis
    # of the x block here (add a parallel S-tile grid axis).


# ---------------------------------------------------------------------------
# Kernel 2: fused Q projection + attention + output projection
# ---------------------------------------------------------------------------
def _attention_kernel(x_ref, wq_ref, bq_ref, kv_ref, wo_ref, bo_ref,
                      o_ref, acc_ref, *, hd, tk):
    """Grid (B, n_q, H), heads innermost ("arbitrary" accumulation axis).

    x_ref  : (1, tq, D_in)     bf16 ; index (b, i) -> resident across heads
    wq_ref : (H, D_in, hd)     bf16 ; resident (1/sqrt(hd) folded in)
    bq_ref : (H, 1, hd)        f32  ; resident (scaled)
    kv_ref : (1, H, S, 2*hd)   bf16 ; index only on b -> resident per batch
    wo_ref : (H, hd, E)        bf16 ; resident
    bo_ref : (1, E)            f32  ; resident
    o_ref  : (1, tq, E)        output block (written at last head)
    acc_ref: (tq, E)           f32 scratch, resident across the head axis
    """
    h = pl.program_id(2)

    @pl.when(h == 0)
    def _init():
        acc_ref[...] = jnp.broadcast_to(
            bo_ref[...].astype(jnp.float32), acc_ref.shape)

    # Q projection fused in (scale pre-folded into Wq / bq).
    q = jnp.dot(x_ref[0], wq_ref[h], preferred_element_type=jnp.float32)
    q = (q + bq_ref[h]).astype(kv_ref.dtype)                    # (tq, hd) bf16

    tq = q.shape[0]
    seq_len = kv_ref.shape[2]
    n_chunks = seq_len // tk                                    # static

    if n_chunks == 1:
        # Single-shot path: logits over the full (resident) sequence.
        kv = kv_ref[0, h]                                       # (S, 2*hd)
        k = kv[:, :hd]
        v = kv[:, hd:]
        s = lax.dot_general(q, k, (((1,), (1,)), ((), ())),
                            preferred_element_type=jnp.float32)  # (tq, S)
        m = jnp.max(s, axis=-1, keepdims=True)
        p = jnp.exp(s - m)
        l = jnp.sum(p, axis=-1, keepdims=True)
        pv = jnp.dot(p.astype(v.dtype), v,
                     preferred_element_type=jnp.float32)         # (tq, hd)
    else:
        # Flash-style online softmax over KV chunks (bounds the f32 logits
        # intermediate to (tq, tk) and overlaps EUP exp with MXU work).
        def body(c, carry):
            m_prev, l_prev, pv_prev = carry
            start = pl.multiple_of(c * tk, tk)
            kv_c = kv_ref[0, h, pl.ds(start, tk), :]             # (tk, 2*hd)
            k = kv_c[:, :hd]
            v = kv_c[:, hd:]
            s = lax.dot_general(q, k, (((1,), (1,)), ((), ())),
                                preferred_element_type=jnp.float32)  # (tq, tk)
            m_new = jnp.maximum(m_prev, jnp.max(s, axis=-1, keepdims=True))
            alpha = jnp.exp(m_prev - m_new)
            p = jnp.exp(s - m_new)
            l_new = alpha * l_prev + jnp.sum(p, axis=-1, keepdims=True)
            pv_new = alpha * pv_prev + jnp.dot(
                p.astype(kv_c.dtype), v, preferred_element_type=jnp.float32)
            return m_new, l_new, pv_new

        m0 = jnp.full((tq, 1), -1e30, jnp.float32)
        l0 = jnp.zeros((tq, 1), jnp.float32)
        pv0 = jnp.zeros((tq, hd), jnp.float32)
        _, l, pv = lax.fori_loop(0, n_chunks, body, (m0, l0, pv0),
                                 unroll=(n_chunks <= 8))

    # Deferred softmax normalization: scale the (tq, hd) PV result rather than
    # the (tq, S) probabilities.  Reciprocal on the EUP slot.
    inv = pl.reciprocal(l, approx=True)
    pv = pv * inv

    # Decomposed output projection: acc += (softmax @ V)_h @ Wo[h]
    acc_ref[...] += jnp.dot(pv.astype(wo_ref.dtype), wo_ref[h],
                            preferred_element_type=jnp.float32)  # (tq, E)

    @pl.when(h == pl.num_programs(2) - 1)
    def _finalize():
        o_ref[0] = acc_ref[...].astype(o_ref.dtype)


# ---------------------------------------------------------------------------
# Wrapper
# ---------------------------------------------------------------------------
def _choose_q_tile(seq_len):
    # 256 fills the v6e/v7x MXU M dim without blowing VMEM (v7x = 64 MiB);
    # 128 is enough for v5e.  Fall back to the full sequence when short.
    for cand in (256, 128):
        if seq_len % cand == 0:
            return cand
    return seq_len
    # TODO(synk): pad/mask query tiles for sequence lengths not divisible by 128.


def _choose_kv_chunk(seq_len):
    if seq_len <= 512:
        return seq_len
    for cand in (512, 256, 128):
        if seq_len % cand == 0:
            return cand
    return seq_len


def _clamp_vmem(nbytes):
    est = int(nbytes * 1.5) + (2 << 20)
    # Stay within every generation's physical VMEM (v7x has only 64 MiB).
    return int(max(16 << 20, min(est, 64 << 20)))


def multihead_attention(x, w_qkv, b_qkv, w_o, b_o, *, num_heads,
                        compute_dtype=jnp.bfloat16):
    """x: (B, S, D_in). Weights/biases in PyTorch nn.Linear layout:
    w_qkv: (3E, D_in), b_qkv: (3E,), w_o: (E, E), b_o: (E,).
    Returns (B, S, E) in x.dtype."""
    B, S, D_in = x.shape
    E = w_qkv.shape[0] // 3
    H = num_heads
    hd = E // H
    scale = 1.0 / math.sqrt(hd)
    cbytes = jnp.dtype(compute_dtype).itemsize

    # --- trace-time relayout to lane-aligned, head-major parameter blocks ---
    # NOTE: this module reshapes its qkv projection as (B,S,H,3*hd) and chunks
    # the last dim, i.e. per-head-interleaved [q_h|k_h|v_h] columns, so the
    # weight rows reshape to (H, 3, hd, D_in).  (torch.nn.MultiheadAttention's
    # stacked [Wq;Wk;Wv] layout would instead need reshape(3, H, hd, D_in).)
    w_full = w_qkv.astype(jnp.float32).reshape(H, 3, hd, D_in)
    wq = jnp.transpose(w_full[:, 0], (0, 2, 1)) * scale          # (H, D_in, hd)
    wk = jnp.transpose(w_full[:, 1], (0, 2, 1))                  # (H, D_in, hd)
    wv = jnp.transpose(w_full[:, 2], (0, 2, 1))                  # (H, D_in, hd)
    wkv = jnp.concatenate([wk, wv], axis=-1)                     # (H, D_in, 2hd)

    b_full = b_qkv.astype(jnp.float32).reshape(H, 3, hd)
    bq = (b_full[:, 0] * scale).reshape(H, 1, hd)
    bkv = jnp.concatenate([b_full[:, 1], b_full[:, 2]],
                          axis=-1).reshape(H, 1, 2 * hd)

    # o = values @ w_o.T with value columns ordered (head, dim) head-major.
    wo_heads = jnp.transpose(w_o.astype(jnp.float32), (1, 0)).reshape(H, hd, E)
    bo = b_o.astype(jnp.float32).reshape(1, E)

    x_c = x.astype(compute_dtype)
    wq = wq.astype(compute_dtype)
    wkv = wkv.astype(compute_dtype)
    wo_heads = wo_heads.astype(compute_dtype)

    # --- kernel 1: fused K/V projection -> (B, H, S, 2*hd) ------------------
    vmem1 = 2 * (S * D_in * cbytes                 # x (double buffered)
                 + H * D_in * 2 * hd * cbytes      # wkv
                 + H * 2 * hd * 4                  # bkv
                 + S * 2 * hd * cbytes)            # kv output block
    kv = pl.pallas_call(
        _kv_proj_kernel,
        out_shape=jax.ShapeDtypeStruct((B, H, S, 2 * hd), compute_dtype),
        grid_spec=pltpu.PrefetchScalarGridSpec(
            num_scalar_prefetch=0,
            grid=(B, H),
            in_specs=[
                pl.BlockSpec((1, S, D_in), lambda b, h: (b, 0, 0)),
                pl.BlockSpec((H, D_in, 2 * hd), lambda b, h: (0, 0, 0)),
                pl.BlockSpec((H, 1, 2 * hd), lambda b, h: (0, 0, 0)),
            ],
            out_specs=pl.BlockSpec((1, 1, S, 2 * hd),
                                   lambda b, h: (b, h, 0, 0)),
        ),
        compiler_params=pltpu.CompilerParams(
            dimension_semantics=("parallel", "parallel"),
            vmem_limit_bytes=_clamp_vmem(vmem1)),
    )(x_c, wkv, bkv)

    # --- kernel 2: Q projection + attention + fused output projection -------
    tq = _choose_q_tile(S)
    n_q = S // tq
    tk = _choose_kv_chunk(S)

    vmem2 = (2 * (tq * D_in * cbytes               # x tile
                  + H * D_in * hd * cbytes         # wq
                  + H * hd * 4                     # bq
                  + H * S * 2 * hd * cbytes        # resident KV (per batch)
                  + H * hd * E * cbytes            # wo
                  + E * 4                          # bo
                  + tq * E * jnp.dtype(x.dtype).itemsize)  # output block
             + tq * E * 4                          # f32 accumulator scratch
             + 4 * tq * min(S, tk) * 4)            # logits/exp intermediates

    out = pl.pallas_call(
        functools.partial(_attention_kernel, hd=hd, tk=tk),
        out_shape=jax.ShapeDtypeStruct((B, S, E), x.dtype),
        grid_spec=pltpu.PrefetchScalarGridSpec(
            num_scalar_prefetch=0,
            grid=(B, n_q, H),
            in_specs=[
                pl.BlockSpec((1, tq, D_in), lambda b, i, h: (b, i, 0)),
                pl.BlockSpec((H, D_in, hd), lambda b, i, h: (0, 0, 0)),
                pl.BlockSpec((H, 1, hd), lambda b, i, h: (0, 0, 0)),
                pl.BlockSpec((1, H, S, 2 * hd), lambda b, i, h: (b, 0, 0, 0)),
                pl.BlockSpec((H, hd, E), lambda b, i, h: (0, 0, 0)),
                pl.BlockSpec((1, E), lambda b, i, h: (0, 0)),
            ],
            out_specs=pl.BlockSpec((1, tq, E), lambda b, i, h: (b, i, 0)),
            scratch_shapes=[pltpu.VMEM((tq, E), jnp.float32)],
        ),
        compiler_params=pltpu.CompilerParams(
            dimension_semantics=("parallel", "parallel", "arbitrary"),
            vmem_limit_bytes=_clamp_vmem(vmem2)),
    )(x_c, wq, bq, kv, wo_heads, bo)

    return out
    # TODO(synk): head-pair packing (2*hd = 128 lanes) for kernel-2 q/k/v when
    # hd < 128 would further improve lane density of the attention matmuls.


# ---------------------------------------------------------------------------
# Reference & test
# ---------------------------------------------------------------------------
def xavier_uniform(key, out_features, in_features, dtype=jnp.float32):
    """Matches torch.nn.init.xavier_uniform_ on a (out, in) Linear weight."""
    bound = math.sqrt(6.0 / (in_features + out_features))
    return jax.random.uniform(key, (out_features, in_features), dtype=dtype,
                              minval=-bound, maxval=bound)


def reference_mha(x, w_qkv, b_qkv, w_o, b_o, num_heads):
    """Pure-JAX f32 reference mirroring the PyTorch module exactly."""
    B, S, _ = x.shape
    E = w_qkv.shape[0] // 3
    hd = E // num_heads
    qkv = x @ w_qkv.T + b_qkv                                   # (B, S, 3E)
    qkv = qkv.reshape(B, S, num_heads, 3 * hd).transpose(0, 2, 1, 3)
    q, k, v = jnp.split(qkv, 3, axis=-1)
    logits = jnp.einsum("bhqd,bhkd->bhqk", q, k) / math.sqrt(hd)
    attn = jax.nn.softmax(logits, axis=-1)
    vals = jnp.einsum("bhqk,bhkd->bhqd", attn, v)
    vals = vals.transpose(0, 2, 1, 3).reshape(B, S, E)
    return vals @ w_o.T + b_o


def _run_case(B, S, input_dim, embed_dim, num_heads):
    key = jax.random.PRNGKey(0)
    kx, kqkv, ko, kbq, kbo = jax.random.split(key, 5)

    x = jax.random.normal(kx, (B, S, input_dim), dtype=jnp.float32)
    # PyTorch Linear layout (out, in); xavier_uniform init. The module zeroes
    # the biases at init; use small random biases to exercise the bias path.
    w_qkv = xavier_uniform(kqkv, 3 * embed_dim, input_dim)      # (3E, D_in)
    w_o = xavier_uniform(ko, embed_dim, embed_dim)              # (E, E)
    b_qkv = 0.1 * jax.random.normal(kbq, (3 * embed_dim,), dtype=jnp.float32)
    b_o = 0.1 * jax.random.normal(kbo, (embed_dim,), dtype=jnp.float32)

    out = multihead_attention(x, w_qkv, b_qkv, w_o, b_o, num_heads=num_heads)
    out = jax.block_until_ready(out)

    ref = reference_mha(x, w_qkv, b_qkv, w_o, b_o, num_heads)
    assert out.shape == (B, S, embed_dim)
    # bf16 MXU operands + approx reciprocal => relaxed tolerance vs f32 ref.
    err = float(jnp.max(jnp.abs(out - ref)))
    assert jnp.allclose(out, ref, atol=5e-2, rtol=5e-2), (
        f"mismatch vs reference (B={B}, S={S}): max abs err {err}")


if __name__ == "__main__":
    # Small shapes consistent with the module's forward (single-chunk path).
    _run_case(B=2, S=8, input_dim=32, embed_dim=32, num_heads=4)
    # Moderate shapes exercising query tiling + chunked online softmax.
    _run_case(B=2, S=1024, input_dim=64, embed_dim=64, num_heads=4)

    # TODO(synk): attention-dropout (module built with dropout=None), the mask
    # argument, and return_attention=True are not exposed by this kernel.
    print("KERNEL_OK")
</pallas_src>

<mosaic_0001>
module attributes {stable_mosaic.version = 11 : i64} {
  func.func @_kv_proj_kernel(%arg0: i32, %arg1: i32, %arg2: memref<1x8x32xbf16, #tpu.memory_space<vmem>>, %arg3: memref<4x32x16xbf16, #tpu.memory_space<vmem>>, %arg4: memref<4x1x16xf32, #tpu.memory_space<vmem>>, %arg5: memref<1x1x8x16xbf16, #tpu.memory_space<vmem>>) attributes {dimension_semantics = [#tpu.dimension_semantics<parallel>, #tpu.dimension_semantics<parallel>], iteration_bounds = array<i64: 2, 4>, scalar_prefetch = 0 : i64, scratch_operands = 0 : i64, tpu.core_type = #tpu.core_type<tc>, window_params = [{transform_indices = @transform_0, window_bounds = array<i64: 1, 8, 32>}, {pipeline_mode = #tpu.pipeline_mode<synchronous>, transform_indices = @transform_1, window_bounds = array<i64: 4, 32, 16>}, {pipeline_mode = #tpu.pipeline_mode<synchronous>, transform_indices = @transform_2, window_bounds = array<i64: 4, 1, 16>}, {transform_indices = @transform_3, window_bounds = array<i64: 1, 1, 8, 16>}]} {
    %c0 = arith.constant 0 : index
    %c0_0 = arith.constant 0 : index
    %c0_1 = arith.constant 0 : index
    %0 = vector.load %arg2[%c0, %c0_0, %c0_1] : memref<1x8x32xbf16, #tpu.memory_space<vmem>>, vector<1x8x32xbf16>
    %1 = vector.shape_cast %0 : vector<1x8x32xbf16> to vector<8x32xbf16>
    %2 = arith.index_cast %arg1 : i32 to index
    %c0_2 = arith.constant 0 : index
    %c0_3 = arith.constant 0 : index
    %3 = vector.load %arg3[%2, %c0_2, %c0_3] : memref<4x32x16xbf16, #tpu.memory_space<vmem>>, vector<1x32x16xbf16>
    %4 = vector.shape_cast %3 : vector<1x32x16xbf16> to vector<32x16xbf16>
    %cst = arith.constant dense<0.000000e+00> : vector<8x16xf32>
    %5 = tpu.matmul %1, %4, %cst {dimension_numbers = #tpu.dot_dimension_numbers<[1], [0], [0], [1], [0, 0, 1, 1], [], []>} : vector<8x32xbf16>, vector<32x16xbf16>, vector<8x16xf32> -> vector<8x16xf32>
    %6 = arith.index_cast %arg1 : i32 to index
    %c0_4 = arith.constant 0 : index
    %c0_5 = arith.constant 0 : index
    %7 = vector.load %arg4[%6, %c0_4, %c0_5] : memref<4x1x16xf32, #tpu.memory_space<vmem>>, vector<1x1x16xf32>
    %8 = vector.shape_cast %7 : vector<1x1x16xf32> to vector<1x16xf32>
    %9 = vector.broadcast %8 : vector<1x16xf32> to vector<8x16xf32>
    %10 = arith.addf %5, %9 : vector<8x16xf32>
    %11 = arith.truncf %10 : vector<8x16xf32> to vector<8x16xbf16>
    %c0_6 = arith.constant 0 : index
    %c0_7 = arith.constant 0 : index
    %c0_8 = arith.constant 0 : index
    %c0_9 = arith.constant 0 : index
    %12 = vector.load %arg5[%c0_6, %c0_7, %c0_8, %c0_9] : memref<1x1x8x16xbf16, #tpu.memory_space<vmem>>, vector<1x1x8x16xbf16>
    %13 = vector.shape_cast %12 : vector<1x1x8x16xbf16> to vector<8x16xbf16>
    %14 = vector.shape_cast %11 : vector<8x16xbf16> to vector<1x1x8x16xbf16>
    tpu.vector_store %arg5[%c0_6, %c0_7, %c0_8, %c0_9], %14 {strides = array<i32>} : memref<1x1x8x16xbf16, #tpu.memory_space<vmem>>, vector<1x1x8x16xbf16>,
    return
  }
  func.func @transform_0(%arg0: i32, %arg1: i32) -> (i32, i32, i32) {
    %c0_i32 = arith.constant 0 : i32
    %c0_i32_0 = arith.constant 0 : i32
    %c0_i32_1 = arith.constant 0 : i32
    return %arg0, %c0_i32, %c0_i32_0 : i32, i32, i32
  }
  func.func @transform_1(%arg0: i32, %arg1: i32) -> (i32, i32, i32) {
    %c0_i32 = arith.constant 0 : i32
    %c0_i32_0 = arith.constant 0 : i32
    %c0_i32_1 = arith.constant 0 : i32
    %c0_i32_2 = arith.constant 0 : i32
    return %c0_i32, %c0_i32_0, %c0_i32_1 : i32, i32, i32
  }
  func.func @transform_2(%arg0: i32, %arg1: i32) -> (i32, i32, i32) {
    %c0_i32 = arith.constant 0 : i32
    %c0_i32_0 = arith.constant 0 : i32
    %c0_i32_1 = arith.constant 0 : i32
    %c0_i32_2 = arith.constant 0 : i32
    return %c0_i32, %c0_i32_0, %c0_i32_1 : i32, i32, i32
  }
  func.func @transform_3(%arg0: i32, %arg1: i32) -> (i32, i32, i32, i32) {
    %c0_i32 = arith.constant 0 : i32
    %c0_i32_0 = arith.constant 0 : i32
    %c0_i32_1 = arith.constant 0 : i32
    return %arg0, %arg1, %c0_i32, %c0_i32_0 : i32, i32, i32, i32
  }
}

</mosaic_0001>

<bundles_post_ra>
// kernel: tpu_custom_call.1
= control target key start
LH: loop header
LB: loop body
LE: loop exit
PB: predicated region body
PF: predicated region fallthrough
CT: control target
= control target key end

     0   :  { %8 = vsyncpa [#allocation3], 0  ;;  %s714_s0 = inlined_call_operand.vmem [shape: bf16[2,8,32], index: 0, kind: input, shape index: {}]   ;;  %s715_s1 = inlined_call_operand.vmem [shape: bf16[4,32,16], index: 1, kind: input, shape index: {}]   ;;  %s716_s2 = inlined_call_operand.vmem [shape: f32[4,1,16], index: 2, kind: input, shape index: {}]   ;;  %s717_s3 = inlined_call_operand.hbm [shape: bf16[2,4,8,16], index: 3, kind: output, shape index: {}]  }
   0x1   :  { %10 = vsyncpa [#allocation3 + $0x1], 0  ;;  %s571_s12 = smov 0   ;;  %s573_s13 = smov 0  }
   0x2   :  { %s575_s14 = smov 0   ;;  %s577_s15 = smov 0  }
   0x3   :  { %s579_s16 = smov 0   ;;  %s581_s17 = smov 0  }
   0x4   :  { %s583_s18 = smov 0   ;;  %s585_s19 = smov 0  }
   0x5 LB: > { %s347_s20 = sadd.s32 4294967295, %s546_s19   ;;  %s348_s21 = sadd.s32 4294967294, %s546_s19   ;;  %s546_s19 = sphi %s585_s19, %s16_s19   ;;  %s542_s18 = sphi %s583_s18, %s726_s18   ;;  %s538_s17 = sphi %s581_s17, %s725_s17   ;;  %s534_s16 = sphi %s579_s16, %s724_s16   ;;  %s530_s15 = sphi %s577_s15, %s723_s15   ;;  %s526_s14 = sphi %s575_s14, %s722_s14   ;;  %s522_s13 = sphi %s573_s13, %s721_s13   ;;  %s518_s12 = sphi %s571_s12, %s720_s12  }
   0x6   : > { %s25_s22 = sadd.s32 1, %s538_s17  ;;  %s28_s23 = sadd.s32 1, %s542_s18 }
   0x7   : > { %p26_p0 = scmp.ge.s32.totalorder %s25_s22, 4  ;;  %p115_p1 = scmp.ne.s32.totalorder %s526_s14, %s522_s13 }
   0x8   : > { %p116_p2 = scmp.eq.s32.totalorder %s347_s20, 7  ;;  %p121_p5 = scmp.ne.s32.totalorder %s522_s13, %s518_s12 }
   0x9   : > { %s728_s22 = smov (%p26_p0, %s25_s22), 0  ;;  %s730_s23 = smov (!%p26_p0, %s28_s23), %s542_s18 }
   0xa   : > { %s101_s24 = ssub.s32 %s538_s17, %s728_s22  ;;  %p622_p3 = por %p116_p2, %p115_p1 }
   0xb   : > { %p30_p4 = scmp.ge.s32.totalorder %s730_s23, 2  ;;  %p122_p6 = scmp.eq.s32.totalorder %s348_s21, 7 }
   0xc   : > { %p351_p7 = scmp.ge.s32.totalorder %s546_s19, 1  ;;  %p153_p9 = scmp.lt.s32.totalorder %s546_s19, 9 }
   0xd   : > { %s732_s23 = smov (%p30_p4, %s730_s23), 0  ;;  %p631_p8 = por %p122_p6, %p121_p5 }
   0xe   : > { %s100_s27 = ssub.s32 %s542_s18, %s732_s23  ;;  %s105_s28 = sadd.s32 1, %s526_s14 }
   0xf   : > { %s102_s29 = sor.u32 %s101_s24, %s100_s27  ;;  %p154_p10 = pnand %p351_p7, %p153_p9 }
  0x10   : > { %p103_p11 = scmp.eq.s32.totalorder %s102_s29, 0  ;;  %s365_s4 = sshll.u32 (!%p154_p10), %s530_s15, 4  ;;  %v548_v0 = vmov (!%p154_p10), 0.0   ;;  %vm549_vm0 = vmmov (!%p154_p10), 0   ;;  %vm209_vm1 = vcmask (!%p154_p10), 261120   ;;  %vm254_vm2 = vcmask (!%p154_p10), 125952  }
  0x11   : > { %157 = sbr.rel (%p154_p10) target bundleno = 259 (0x103), region = 32  ;;  %p176_p12 = scmp.lt.s32.totalorder (!%p154_p10), %s534_s16, 1  ;;  %369 = vmatprep.subr.bf16.mxu0 (!%p154_p10), %v548_v0  ;;  %373 = vmatprep.mubr.msk.bf16.mxu0 (!%p154_p10), %vm549_vm0, %v548_v0 }
  0x12   : > { %s640_s30 = scalar_select %p103_p11, %s526_s14, %s105_s28  }
  0x13   : > { %s184_s7 = scalar_lea.vmem (!%p154_p10), %s715_s1, %s365_s4  ;;  %s173_s21 = sand.u32 (!%p154_p10), 1, %s522_s13  }
  0x14   : > { %v450_v1 = vld [vmem:[%s184_s7] sm:$0xff] (!%p154_p10)   ;;  %v451_v2 = vld [vmem:[%s184_s7 + $0x8] sm:$0xff] (!%p154_p10)   ;;  %s352_s24 = sshll.u32 (!%p154_p10), %s173_s21, 2  ;;  %s361_s27 = sshll.u32 (!%p154_p10), %s534_s16, 2 }
  0x15   : > { %370 = vmatpush3.bf16.msra.mxu0 (!%p154_p10), %v450_v1  ;;  %s189_s4 = scalar_lea.vmem (!%p154_p10), %s716_s2, %s530_s15  ;;  %s268_s5 = sadd.s32 (!%p154_p10), %s530_s15, %s361_s27 }
  0x16   : > { %371 = vmatprep.subr.bf16.mxu0 (!%p154_p10), %v548_v0  ;;  %v356_v4 = vld [vmem:[%s189_s4] ss:$0 sm:$0xff] (!%p154_p10)  ;;  %s362_s6 = sshll.u32 (!%p154_p10), %s268_s5, 6  ;;  %s175_s7 = scalar_lea.vmem (!%p154_p10), [#allocation2], %s352_s24 }
  0x17   : > { %s257_s15 = scalar_lea.sflag (!%p154_p10), [#allocation3], %s173_s21 }
  0x18   : > { %s177_s8 = scalar_select %p176_p12, %s534_s16, 1 }
  0x19   : > { %372 = vmatpush3.bf16.msra.mxu0 %v451_v2  ;;  %s661_s16 = scalar_lea.hbm %s717_s3, %s362_s6 }
  0x1a   : > { %s353_s9 = sshll.u32 %s177_s8, 2  ;;  %s272_s8 = sshll.u32 %s175_s7, 4  ;;  %s663_s8 = int_to_ptr.vmem [resolvable:$true] %s272_s8 }
  0x1b   : > { %s179_s20 = scalar_lea.vmem %s714_s0, %s353_s9  ;;  %s452_s11 = scalar_lea.vmem %s663_s8, 64 }
  0x1c   : > { %v181_v3 = vld [vmem:[%s179_s20] sm:$0xf]  ;;  %p453_p13 = scmp.ne.s32.totalorder %s663_s8, %s452_s11  ;;  %s550_s20 = smov [#allocation2]  }
  0x1d   : > { %374 = vmatmul.mubr.msk.bf16.vlgmr.msra.gmra.mrb[0].mxu0 %vm209_vm1, %v181_v3  ;;  %s456_s24 = sshll.u32 %s550_s20, 4  ;;  %s457_s24 = int_to_ptr.vmem [resolvable:$false] %s456_s24 }
  0x1e   : > { %p454_p0 = pnand %p453_p13, %p622_p3  ;;  %s458_s27 = scalar_lea.vmem %s457_s24, 128 }
  0x1f   : > { %p459_p2 = scmp.lt.s32.totalorder %s663_s8, %s457_s24  ;;  %p460_p4 = scmp.lt.s32.totalorder %s458_s27, %s452_s11 }
  0x20   : > { %p455_p1 = pneg %p454_p0 }
  0x21   : > { %p461_p5 = por %p460_p4, %p459_p2 }
  0x23   : > { %p462_p6 = pnand %p461_p5, %p455_p1 }
  0xf0   : > { %v247_v5 = vpop.f32.mrb[0].mxu0 }
  0xf1   : > { %v248_v6 = vadd.f32 %v356_v4, %v247_v5  ;;  %v375_v7 = vpop.f32.mrb[1].mxu0 }
  0xf2   : > { %v250_v8 = vpop.f32.mrb[2].mxu0 }
  0xf3   : > { %v253_v9 = vpack.c.bf16 %v248_v6, %v248_v6  ;;  %v376_v10 = vpop.f32.mrb[3].mxu0 }
  0xf5   : > { %255 = vst.msk [vmem:[%s175_s7] sm:$0xf] %vm254_vm2, %v253_v9 }
  0xf6   : > { %465 = shalt.err (!%p462_p6)
}
  0xf7   : > { %s466_s21 = scalar_lea.hbm %s661_s16, 64  ;;  %s470_s4 = scalar_lea.hbm %s717_s3, 512 }
  0xf8   : > { %p467_p7 = scmp.ne.s32.totalorder %s661_s16, %s466_s21  ;;  %p471_p11 = scmp.lt.u32.totalorder %s661_s16, %s717_s3 }
  0xf9   : > { %p472_p12 = scmp.lt.u32.totalorder %s470_s4, %s466_s21  ;;  %p474_p0 = scmp.lt.u32.totalorder %s466_s21, %s661_s16 }
  0xfa   : > { %p468_p9 = pnand %p467_p7, %p622_p3 }
  0xfb   : > { %p473_p13 = por %p472_p12, %p471_p11 }
  0xfc   : > { %p469_p10 = pneg %p468_p9 }
  0xfd   : > { %p475_p1 = por %p474_p0, %p473_p13 }
  0xff   : > { %p476_p2 = pnand %p475_p1, %p469_p10 }
 0x101   : > { %479 = shalt.err (!%p476_p2)
}
 0x102   : > { %377 = dma.vmem_to_hbm [thread:$0]  (%p622_p3), %s663_s8, 64, %s661_s16, %s257_s15  }
 0x103 PF: > { %p383_p4 = scmp.ge.s32.totalorder %s546_s19, 2  ;;  %s284_s7 = sand.u32 1, %s518_s12  }
 0x104   : > { %s285_s9 = scalar_lea.sflag [#allocation3], %s284_s7 }
 0x105   : > { %p380_p5 = pnand %p383_p4, %p631_p8 }
 0x107   : > { %513 = dma.done.wait (!%p380_p5), %s285_s9, 64  }
 0x108   : > { %515 = vsyncadd (!%p380_p5), %s285_s9, 4294967232  ;;  %s16_s19 = sadd.s32 1, %s546_s19   ;;  %s720_s12 = smov %s522_s13 }
 0x109   : > { %p13_p6 = scmp.ge.s32.totalorder %s16_s19, 10   ;;  %s721_s13 = smov %s526_s14 }
 0x10a   : > { %s722_s14 = smov %s640_s30  ;;  %s723_s15 = smov %s538_s17 }
 0x10b   : > { %s724_s16 = smov %s542_s18  ;;  %s725_s17 = smov %s728_s22 }
 0x10c   : > { %s726_s18 = smov %s732_s23  ;;  %15 = sbr.rel (!%p13_p6) target bundleno = 5 (0x5), region = 69 }
 0x113   :  { %290 = vsyncpa [#allocation3], 1 }
 0x114   :  { %292 = vsyncpa [#allocation3 + $0x1], 1 }

</bundles_post_ra>
